<compile_context>
chip_gen: v6e
topology: v6e:2x2x1
jax: 0.10.0
libtpu: 0.0.40
codegen_flags: <defaults>
</compile_context>

<pallas_src>
import functools

import jax
import jax.numpy as jnp
import numpy as np
from jax import lax
from jax.experimental import pallas as pl
from jax.experimental.pallas import tpu as pltpu


def _round_up(x, m):
    return (x + m - 1) // m * m


# ----------------------------------------------------------------------------
# Fused TemporalBlock kernel: one (batch, time-tile) grid step per invocation
# ----------------------------------------------------------------------------
def _temporal_block_kernel(x_ref, w1_ref, b1_ref, w2_ref, b2_ref, wd_ref,
                           bd_ref, o_ref, xs_ref, h1s_ref, *,
                           TL, pad, K, dilation, has_downsample):
    # x_ref   : (1, TL, Cin_p)        bf16  current time tile of the input
    # w1_ref  : (K, Cin_p,  Cout_p)   bf16  conv1 weights, one matrix per tap
    # w2_ref  : (K, Cout_p, Cout_p)   bf16  conv2 weights, one matrix per tap
    # wd_ref  : (Cin_p, Cout_p)       bf16  1x1 downsample weights
    # b*_ref  : (1, Cout_p)           f32   biases
    # o_ref   : (1, TL, Cout_p)       bf16  output tile
    # xs_ref  : (pad+TL, Cin_p)  bf16 scratch  halo + current x tile
    # h1s_ref : (pad+TL, Cout_p) bf16 scratch  halo + current h1 tile
    lt = pl.program_id(1)
    cin_p = xs_ref.shape[1]
    cout_p = h1s_ref.shape[1]

    @pl.when(lt == 0)
    def _():  # causal left zero-padding at the start of every batch row
        xs_ref[0:pad, :] = jnp.zeros((pad, cin_p), jnp.bfloat16)
        h1s_ref[0:pad, :] = jnp.zeros((pad, cout_p), jnp.bfloat16)

    @pl.when(lt > 0)
    def _():  # carry the causal halo: last `pad` rows of the previous tile
        xs_ref[0:pad, :] = xs_ref[TL:TL + pad, :]
        h1s_ref[0:pad, :] = h1s_ref[TL:TL + pad, :]

    x_new = x_ref[0]                                  # (TL, Cin_p) bf16
    xs_ref[pad:pad + TL, :] = x_new

    # ---- conv1 + bias + ReLU: K accumulating MXU matmuls over tap slices of
    #      the resident staging scratch (no im2col temporaries).
    acc1 = jnp.zeros((TL, cout_p), jnp.float32)
    for k in range(K):
        off = k * dilation
        acc1 = acc1 + jnp.dot(xs_ref[off:off + TL, :], w1_ref[k],
                              preferred_element_type=jnp.float32)
    h1 = jnp.maximum(acc1 + b1_ref[...], 0.0)         # (TL, Cout_p) f32
    h1s_ref[pad:pad + TL, :] = h1.astype(jnp.bfloat16)

    # ---- conv2 + bias + ReLU (the inner ReLU == output of PyTorch `self.net`)
    acc2 = jnp.zeros((TL, cout_p), jnp.float32)
    for k in range(K):
        off = k * dilation
        acc2 = acc2 + jnp.dot(h1s_ref[off:off + TL, :], w2_ref[k],
                              preferred_element_type=jnp.float32)
    h2 = jnp.maximum(acc2 + b2_ref[...], 0.0)

    # ---- residual branch (1x1 downsample or identity) + final ReLU.
    if has_downsample:
        res = jnp.dot(x_new, wd_ref[...],
                      preferred_element_type=jnp.float32) + bd_ref[...]
    else:
        # NOTE: residual is the bf16-cast input (PyTorch keeps f32); within
        # tolerance for this block, A/B if stacking many blocks.
        res = x_new.astype(jnp.float32)
    o_ref[0] = jnp.maximum(h2 + res, 0.0).astype(o_ref.dtype)


# ----------------------------------------------------------------------------
# Weight prep (weight-norm reparameterization + lane-dense per-tap layout)
# ----------------------------------------------------------------------------
def weight_norm_effective(v, g):
    """PyTorch weight_norm (dim=0): W[o] = g[o] * V[o] / ||V[o]||_2, in f32."""
    v = v.astype(jnp.float32)
    norm = jnp.sqrt(jnp.sum(v ** 2, axis=(1, 2), keepdims=True))
    return (g.astype(jnp.float32).reshape(-1, 1, 1) * v) / norm


def _conv_w_to_taps(w_oik, cin_p, cout_p):
    """(Cout, Cin, K) conv weight -> bf16 (K, Cin_p, Cout_p) tap matrices."""
    cout, cin, k = w_oik.shape
    w_kio = jnp.transpose(w_oik.astype(jnp.float32), (2, 1, 0))   # (K, Cin, Cout)
    w_kio = jnp.pad(w_kio, ((0, 0), (0, cin_p - cin), (0, cout_p - cout)))
    return w_kio.astype(jnp.bfloat16)


def _pad_bias(b, cout_p):
    b = b.astype(jnp.float32)
    return jnp.pad(b, (0, cout_p - b.shape[0])).reshape(1, cout_p)


def prepare_temporal_block_params(params, *, kernel_size, n_inputs):
    """One-time (per network) weight prep; reused across calls / blocks."""
    w1 = weight_norm_effective(params["v1"], params["g1"])        # (Cout, Cin, K)
    w2 = weight_norm_effective(params["v2"], params["g2"])        # (Cout, Cout, K)
    n_outputs = w1.shape[0]
    cin_p, cout_p = _round_up(n_inputs, 128), _round_up(n_outputs, 128)
    return {
        "w1": _conv_w_to_taps(w1, cin_p, cout_p),                 # (K, Cin_p, Cout_p)
        "w2": _conv_w_to_taps(w2, cout_p, cout_p),                # (K, Cout_p, Cout_p)
        "wd": _conv_w_to_taps(params["wd"], cin_p, cout_p)[0],    # (Cin_p, Cout_p)
        "b1": _pad_bias(params["b1"], cout_p),
        "b2": _pad_bias(params["b2"], cout_p),
        "bd": _pad_bias(params["bd"], cout_p),
        "n_inputs": n_inputs, "n_outputs": n_outputs,
        "cin_p": cin_p, "cout_p": cout_p,
        "kernel_size": kernel_size,
        "has_downsample": n_inputs != n_outputs,
    }


# ----------------------------------------------------------------------------
# Core apply: padded (B, L, Cin_p) bf16 -> (B, L, Cout_p) bf16
# (stacked TemporalBlocks chain this directly, no layout round-trips)
# ----------------------------------------------------------------------------
def temporal_block_apply(x_blcp, prep, *, dilation, tl=512):
    B, L, Cin_p = x_blcp.shape
    assert Cin_p == prep["cin_p"], (Cin_p, prep["cin_p"])
    K = prep["kernel_size"]
    Cout_p = prep["cout_p"]
    pad = (K - 1) * dilation
    assert pad >= 1, "kernel_size must be >= 2 (Chomp1d requires padding > 0)"

    # Time tiling: 16-row granularity (bf16 sublane packing); TL >= pad so the
    # halo memmove source lies entirely in the freshly written tile rows.
    TL = _round_up(max(16, min(int(tl), _round_up(L, 16))), 16)
    TL = max(TL, _round_up(pad, 16))
    L_pad = _round_up(L, TL)
    num_lt = L_pad // TL
    if L_pad != L:
        x_blcp = jnp.pad(x_blcp, ((0, 0), (0, L_pad - L), (0, 0)))

    kernel = functools.partial(_temporal_block_kernel, TL=TL, pad=pad, K=K,
                               dilation=dilation,
                               has_downsample=prep["has_downsample"])

    flops = 2 * B * L_pad * (K * Cin_p * Cout_p + K * Cout_p * Cout_p
                             + (Cin_p * Cout_p if prep["has_downsample"] else 0))
    bytes_accessed = (B * L_pad * Cin_p * 2
                      + prep["w1"].size * 2 + prep["w2"].size * 2
                      + prep["wd"].size * 2 + 3 * Cout_p * 4
                      + B * L_pad * Cout_p * 2)

    out = pl.pallas_call(
        kernel,
        out_shape=jax.ShapeDtypeStruct((B, L_pad, Cout_p), jnp.bfloat16),
        grid_spec=pltpu.PrefetchScalarGridSpec(
            num_scalar_prefetch=0,
            grid=(B, num_lt),
            in_specs=[
                pl.BlockSpec((1, TL, Cin_p), lambda b, l: (b, l, 0)),
                pl.BlockSpec((K, Cin_p, Cout_p), lambda b, l: (0, 0, 0)),
                pl.BlockSpec((1, Cout_p), lambda b, l: (0, 0)),
                pl.BlockSpec((K, Cout_p, Cout_p), lambda b, l: (0, 0, 0)),
                pl.BlockSpec((1, Cout_p), lambda b, l: (0, 0)),
                pl.BlockSpec((Cin_p, Cout_p), lambda b, l: (0, 0)),
                pl.BlockSpec((1, Cout_p), lambda b, l: (0, 0)),
            ],
            out_specs=pl.BlockSpec((1, TL, Cout_p), lambda b, l: (b, l, 0)),
            scratch_shapes=[pltpu.VMEM((pad + TL, Cin_p), jnp.bfloat16),
                            pltpu.VMEM((pad + TL, Cout_p), jnp.bfloat16)],
        ),
        compiler_params=pltpu.CompilerParams(
            # batch tiles independent (megacore); time tiles must run in order
            # because the causal halo is carried in scratch.
            dimension_semantics=("parallel", "arbitrary"),
            vmem_limit_bytes=64 * 1024 * 1024),
        cost_estimate=pl.CostEstimate(flops=int(flops), transcendentals=0,
                                      bytes_accessed=int(bytes_accessed)),
    )(x_blcp, prep["w1"], prep["b1"], prep["w2"], prep["b2"],
      prep["wd"], prep["bd"])

    if L_pad != L:
        out = out[:, :L, :]
    return out


# ----------------------------------------------------------------------------
# PyTorch-compatible wrapper (NCL in / NCL f32 out) — boundary conversions only
# ----------------------------------------------------------------------------
def temporal_block_forward(x_ncl, params, *, kernel_size, stride, dilation,
                           tl=512):
    """TemporalBlock forward. x_ncl: (B, Cin, L). Returns (B, Cout, L) f32."""
    assert stride == 1, "TCN TemporalBlock uses stride=1"
    B, Cin, L = x_ncl.shape
    prep = prepare_temporal_block_params(params, kernel_size=kernel_size,
                                         n_inputs=Cin)
    Cin_p = prep["cin_p"]

    x_blc = jnp.transpose(x_ncl, (0, 2, 1)).astype(jnp.float32)   # (B, L, Cin)
    x_p = jnp.pad(x_blc, ((0, 0), (0, 0), (0, Cin_p - Cin))
                  ).astype(jnp.bfloat16)                          # (B, L, Cin_p)

    out = temporal_block_apply(x_p, prep, dilation=dilation, tl=tl)
    out = out[:, :, :prep["n_outputs"]].astype(jnp.float32)
    return jnp.transpose(out, (0, 2, 1))                          # (B, Cout, L)


# ----------------------------------------------------------------------------
# Parameter setup (deterministic, synthetic)
# ----------------------------------------------------------------------------
def init_temporal_block_params(key, n_inputs, n_outputs, kernel_size):
    ks = jax.random.split(key, 8)
    p = {}
    p["v1"] = 0.01 * jax.random.normal(ks[0], (n_outputs, n_inputs, kernel_size),
                                       jnp.float32)
    p["g1"] = 0.5 + jax.random.uniform(ks[1], (n_outputs,), jnp.float32)
    p["b1"] = 0.1 * jax.random.normal(ks[2], (n_outputs,), jnp.float32)
    p["v2"] = 0.01 * jax.random.normal(ks[3], (n_outputs, n_outputs, kernel_size),
                                       jnp.float32)
    p["g2"] = 0.5 + jax.random.uniform(ks[4], (n_outputs,), jnp.float32)
    p["b2"] = 0.1 * jax.random.normal(ks[5], (n_outputs,), jnp.float32)
    p["wd"] = 0.01 * jax.random.normal(ks[6], (n_outputs, n_inputs, 1),
                                       jnp.float32)
    p["bd"] = 0.1 * jax.random.normal(ks[7], (n_outputs,), jnp.float32)
    return p


# ----------------------------------------------------------------------------
# Pure-JAX f32 reference (matches PyTorch TemporalBlock semantics)
# ----------------------------------------------------------------------------
def _ref_causal_conv(x_ncl, w_oik, bias, dilation):
    pad = (w_oik.shape[2] - 1) * dilation
    y = lax.conv_general_dilated(
        x_ncl, w_oik, window_strides=(1,), padding=[(pad, pad)],
        rhs_dilation=(dilation,),
        dimension_numbers=("NCH", "OIH", "NCH"))
    if pad > 0:
        y = y[:, :, :-pad]
    return y + bias.reshape(1, -1, 1)


def _ref_forward(x_ncl, params, *, dilation):
    w1 = weight_norm_effective(params["v1"], params["g1"])
    w2 = weight_norm_effective(params["v2"], params["g2"])
    h1 = jax.nn.relu(_ref_causal_conv(x_ncl, w1, params["b1"], dilation))
    h2 = jax.nn.relu(_ref_causal_conv(h1, w2, params["b2"], dilation))
    if x_ncl.shape[1] != w1.shape[0]:
        res = _ref_causal_conv(x_ncl, params["wd"], params["bd"], 1)
    else:
        res = x_ncl
    return jax.nn.relu(h2 + res)


# ----------------------------------------------------------------------------
if __name__ == "__main__":
    B, n_inputs, n_outputs, L = 2, 4, 8, 16
    kernel_size, stride, dilation = 3, 1, 2
    # padding = (kernel_size - 1) * dilation, as used in fairmotion's TCN

    key = jax.random.PRNGKey(0)
    k_x, k_p, k_x2, k_p2 = jax.random.split(key, 4)

    # --- case 1: n_inputs != n_outputs (1x1 downsample residual) -------------
    x = jax.random.normal(k_x, (B, n_inputs, L), jnp.float32)     # NCL layout
    params = init_temporal_block_params(k_p, n_inputs, n_outputs, kernel_size)
    fwd = jax.jit(functools.partial(temporal_block_forward,
                                    kernel_size=kernel_size, stride=stride,
                                    dilation=dilation))
    out = jax.block_until_ready(fwd(x, params))
    ref = jax.block_until_ready(_ref_forward(x, params, dilation=dilation))
    assert out.shape == (B, n_outputs, L), out.shape
    # bf16 matmul operands + bf16 output vs. f32 reference -> loose tolerance
    np.testing.assert_allclose(np.asarray(out), np.asarray(ref),
                               rtol=5e-2, atol=5e-2)

    # --- case 2: n_inputs == n_outputs (identity residual), dilation=1 -------
    x2 = jax.random.normal(k_x2, (B, n_outputs, L), jnp.float32)
    params2 = init_temporal_block_params(k_p2, n_outputs, n_outputs, kernel_size)
    fwd2 = jax.jit(functools.partial(temporal_block_forward,
                                     kernel_size=kernel_size, stride=stride,
                                     dilation=1))
    out2 = jax.block_until_ready(fwd2(x2, params2))
    ref2 = jax.block_until_ready(_ref_forward(x2, params2, dilation=1))
    np.testing.assert_allclose(np.asarray(out2), np.asarray(ref2),
                               rtol=5e-2, atol=5e-2)

    print("KERNEL_OK")
</pallas_src>

<mosaic_0001>
module attributes {stable_mosaic.version = 11 : i64} {
  func.func @_temporal_block_kernel(%arg0: i32, %arg1: i32, %arg2: memref<1x16x128xbf16, #tpu.memory_space<vmem>>, %arg3: memref<3x128x128xbf16, #tpu.memory_space<vmem>>, %arg4: memref<1x128xf32, #tpu.memory_space<vmem>>, %arg5: memref<3x128x128xbf16, #tpu.memory_space<vmem>>, %arg6: memref<1x128xf32, #tpu.memory_space<vmem>>, %arg7: memref<128x128xbf16, #tpu.memory_space<vmem>>, %arg8: memref<1x128xf32, #tpu.memory_space<vmem>>, %arg9: memref<1x16x128xbf16, #tpu.memory_space<vmem>>, %arg10: memref<20x128xbf16, #tpu.memory_space<vmem>>, %arg11: memref<20x128xbf16, #tpu.memory_space<vmem>>) attributes {dimension_semantics = [#tpu.dimension_semantics<parallel>, #tpu.dimension_semantics<arbitrary>], iteration_bounds = array<i64: 2, 1>, scalar_prefetch = 0 : i64, scratch_operands = 2 : i64, tpu.core_type = #tpu.core_type<tc>, window_params = [{transform_indices = @transform_0, window_bounds = array<i64: 1, 16, 128>}, {pipeline_mode = #tpu.pipeline_mode<synchronous>, transform_indices = @transform_1, window_bounds = array<i64: 3, 128, 128>}, {pipeline_mode = #tpu.pipeline_mode<synchronous>, transform_indices = @transform_2, window_bounds = array<i64: 1, 128>}, {pipeline_mode = #tpu.pipeline_mode<synchronous>, transform_indices = @transform_3, window_bounds = array<i64: 3, 128, 128>}, {pipeline_mode = #tpu.pipeline_mode<synchronous>, transform_indices = @transform_4, window_bounds = array<i64: 1, 128>}, {pipeline_mode = #tpu.pipeline_mode<synchronous>, transform_indices = @transform_5, window_bounds = array<i64: 128, 128>}, {pipeline_mode = #tpu.pipeline_mode<synchronous>, transform_indices = @transform_6, window_bounds = array<i64: 1, 128>}, {transform_indices = @transform_7, window_bounds = array<i64: 1, 16, 128>}]} {
    %c0_i32 = arith.constant 0 : i32
    %0 = arith.cmpi eq, %arg1, %c0_i32 : i32
    %1 = arith.extui %0 : i1 to i32
    %c0_i32_0 = arith.constant 0 : i32
    %2 = arith.cmpi ne, %1, %c0_i32_0 : i32
    scf.if %2 {
      %cst_58 = arith.constant 0.000000e+00 : bf16
      %65 = vector.broadcast %cst_58 : bf16 to vector<4x128xbf16>
      %c0_59 = arith.constant 0 : index
      %c0_60 = arith.constant 0 : index
      %66 = vector.load %arg10[%c0_59, %c0_60] : memref<20x128xbf16, #tpu.memory_space<vmem>>, vector<4x128xbf16>
      tpu.vector_store %arg10[%c0_59, %c0_60], %65 {strides = array<i32>} : memref<20x128xbf16, #tpu.memory_space<vmem>>, vector<4x128xbf16>,
      %cst_61 = arith.constant 0.000000e+00 : bf16
      %67 = vector.broadcast %cst_61 : bf16 to vector<4x128xbf16>
      %c0_62 = arith.constant 0 : index
      %c0_63 = arith.constant 0 : index
      %68 = vector.load %arg11[%c0_62, %c0_63] : memref<20x128xbf16, #tpu.memory_space<vmem>>, vector<4x128xbf16>
      tpu.vector_store %arg11[%c0_62, %c0_63], %67 {strides = array<i32>} : memref<20x128xbf16, #tpu.memory_space<vmem>>, vector<4x128xbf16>,
    } else {
    }
    %c0_i32_1 = arith.constant 0 : i32
    %3 = arith.cmpi sgt, %arg1, %c0_i32_1 : i32
    %4 = arith.extui %3 : i1 to i32
    %c0_i32_2 = arith.constant 0 : i32
    %5 = arith.cmpi ne, %4, %c0_i32_2 : i32
    scf.if %5 {
      %c16 = arith.constant 16 : index
      %c0_58 = arith.constant 0 : index
      %65 = vector.load %arg10[%c16, %c0_58] : memref<20x128xbf16, #tpu.memory_space<vmem>>, vector<4x128xbf16>
      %c0_59 = arith.constant 0 : index
      %c0_60 = arith.constant 0 : index
      %66 = vector.load %arg10[%c0_59, %c0_60] : memref<20x128xbf16, #tpu.memory_space<vmem>>, vector<4x128xbf16>
      tpu.vector_store %arg10[%c0_59, %c0_60], %65 {strides = array<i32>} : memref<20x128xbf16, #tpu.memory_space<vmem>>, vector<4x128xbf16>,
      %c16_61 = arith.constant 16 : index
      %c0_62 = arith.constant 0 : index
      %67 = vector.load %arg11[%c16_61, %c0_62] : memref<20x128xbf16, #tpu.memory_space<vmem>>, vector<4x128xbf16>
      %c0_63 = arith.constant 0 : index
      %c0_64 = arith.constant 0 : index
      %68 = vector.load %arg11[%c0_63, %c0_64] : memref<20x128xbf16, #tpu.memory_space<vmem>>, vector<4x128xbf16>
      tpu.vector_store %arg11[%c0_63, %c0_64], %67 {strides = array<i32>} : memref<20x128xbf16, #tpu.memory_space<vmem>>, vector<4x128xbf16>,
    } else {
    }
    %c0 = arith.constant 0 : index
    %c0_3 = arith.constant 0 : index
    %c0_4 = arith.constant 0 : index
    %6 = vector.load %arg2[%c0, %c0_3, %c0_4] : memref<1x16x128xbf16, #tpu.memory_space<vmem>>, vector<1x16x128xbf16>
    %7 = vector.shape_cast %6 : vector<1x16x128xbf16> to vector<16x128xbf16>
    %c4 = arith.constant 4 : index
    %c0_5 = arith.constant 0 : index
    %8 = vector.load %arg10[%c4, %c0_5] : memref<20x128xbf16, #tpu.memory_space<vmem>>, vector<16x128xbf16>
    tpu.vector_store %arg10[%c4, %c0_5], %7 {strides = array<i32>} : memref<20x128xbf16, #tpu.memory_space<vmem>>, vector<16x128xbf16>,
    %cst = arith.constant 0.000000e+00 : f32
    %9 = vector.broadcast %cst : f32 to vector<16x128xf32>
    %c0_6 = arith.constant 0 : index
    %c0_7 = arith.constant 0 : index
    %10 = vector.load %arg10[%c0_6, %c0_7] : memref<20x128xbf16, #tpu.memory_space<vmem>>, vector<16x128xbf16>
    %c0_8 = arith.constant 0 : index
    %c0_9 = arith.constant 0 : index
    %c0_10 = arith.constant 0 : index
    %11 = vector.load %arg3[%c0_8, %c0_9, %c0_10] : memref<3x128x128xbf16, #tpu.memory_space<vmem>>, vector<1x128x128xbf16>
    %12 = vector.shape_cast %11 : vector<1x128x128xbf16> to vector<128x128xbf16>
    %cst_11 = arith.constant dense<0.000000e+00> : vector<16x128xf32>
    %13 = tpu.matmul %10, %12, %cst_11 {dimension_numbers = #tpu.dot_dimension_numbers<[1], [0], [0], [1], [0, 0, 1, 1], [], []>} : vector<16x128xbf16>, vector<128x128xbf16>, vector<16x128xf32> -> vector<16x128xf32>
    %14 = arith.addf %9, %13 : vector<16x128xf32>
    %c2 = arith.constant 2 : index
    %c0_12 = arith.constant 0 : index
    %15 = vector.load %arg10[%c2, %c0_12] : memref<20x128xbf16, #tpu.memory_space<vmem>>, vector<16x128xbf16>
    %c1 = arith.constant 1 : index
    %c0_13 = arith.constant 0 : index
    %c0_14 = arith.constant 0 : index
    %16 = vector.load %arg3[%c1, %c0_13, %c0_14] : memref<3x128x128xbf16, #tpu.memory_space<vmem>>, vector<1x128x128xbf16>
    %17 = vector.shape_cast %16 : vector<1x128x128xbf16> to vector<128x128xbf16>
    %cst_15 = arith.constant dense<0.000000e+00> : vector<16x128xf32>
    %18 = tpu.matmul %15, %17, %cst_15 {dimension_numbers = #tpu.dot_dimension_numbers<[1], [0], [0], [1], [0, 0, 1, 1], [], []>} : vector<16x128xbf16>, vector<128x128xbf16>, vector<16x128xf32> -> vector<16x128xf32>
    %19 = arith.addf %14, %18 : vector<16x128xf32>
    %c4_16 = arith.constant 4 : index
    %c0_17 = arith.constant 0 : index
    %20 = vector.load %arg10[%c4_16, %c0_17] : memref<20x128xbf16, #tpu.memory_space<vmem>>, vector<16x128xbf16>
    %c2_18 = arith.constant 2 : index
    %c0_19 = arith.constant 0 : index
    %c0_20 = arith.constant 0 : index
    %21 = vector.load %arg3[%c2_18, %c0_19, %c0_20] : memref<3x128x128xbf16, #tpu.memory_space<vmem>>, vector<1x128x128xbf16>
    %22 = vector.shape_cast %21 : vector<1x128x128xbf16> to vector<128x128xbf16>
    %cst_21 = arith.constant dense<0.000000e+00> : vector<16x128xf32>
    %23 = tpu.matmul %20, %22, %cst_21 {dimension_numbers = #tpu.dot_dimension_numbers<[1], [0], [0], [1], [0, 0, 1, 1], [], []>} : vector<16x128xbf16>, vector<128x128xbf16>, vector<16x128xf32> -> vector<16x128xf32>
    %24 = arith.addf %19, %23 : vector<16x128xf32>
    %c0_22 = arith.constant 0 : index
    %c0_23 = arith.constant 0 : index
    %25 = vector.load %arg4[%c0_22, %c0_23] : memref<1x128xf32, #tpu.memory_space<vmem>>, vector<1x128xf32>
    %26 = vector.broadcast %25 : vector<1x128xf32> to vector<16x128xf32>
    %27 = arith.addf %24, %26 : vector<16x128xf32>
    %cst_24 = arith.constant 0.000000e+00 : f32
    %28 = vector.broadcast %cst_24 : f32 to vector<16x128xf32>
    %29 = arith.maximumf %27, %28 : vector<16x128xf32>
    %30 = arith.truncf %29 : vector<16x128xf32> to vector<16x128xbf16>
    %c4_25 = arith.constant 4 : index
    %c0_26 = arith.constant 0 : index
    %31 = vector.load %arg11[%c4_25, %c0_26] : memref<20x128xbf16, #tpu.memory_space<vmem>>, vector<16x128xbf16>
    tpu.vector_store %arg11[%c4_25, %c0_26], %30 {strides = array<i32>} : memref<20x128xbf16, #tpu.memory_space<vmem>>, vector<16x128xbf16>,
    %cst_27 = arith.constant 0.000000e+00 : f32
    %32 = vector.broadcast %cst_27 : f32 to vector<16x128xf32>
    %c0_28 = arith.constant 0 : index
    %c0_29 = arith.constant 0 : index
    %33 = vector.load %arg11[%c0_28, %c0_29] : memref<20x128xbf16, #tpu.memory_space<vmem>>, vector<16x128xbf16>
    %c0_30 = arith.constant 0 : index
    %c0_31 = arith.constant 0 : index
    %c0_32 = arith.constant 0 : index
    %34 = vector.load %arg5[%c0_30, %c0_31, %c0_32] : memref<3x128x128xbf16, #tpu.memory_space<vmem>>, vector<1x128x128xbf16>
    %35 = vector.shape_cast %34 : vector<1x128x128xbf16> to vector<128x128xbf16>
    %cst_33 = arith.constant dense<0.000000e+00> : vector<16x128xf32>
    %36 = tpu.matmul %33, %35, %cst_33 {dimension_numbers = #tpu.dot_dimension_numbers<[1], [0], [0], [1], [0, 0, 1, 1], [], []>} : vector<16x128xbf16>, vector<128x128xbf16>, vector<16x128xf32> -> vector<16x128xf32>
    %37 = arith.addf %32, %36 : vector<16x128xf32>
    %c2_34 = arith.constant 2 : index
    %c0_35 = arith.constant 0 : index
    %38 = vector.load %arg11[%c2_34, %c0_35] : memref<20x128xbf16, #tpu.memory_space<vmem>>, vector<16x128xbf16>
    %c1_36 = arith.constant 1 : index
    %c0_37 = arith.constant 0 : index
    %c0_38 = arith.constant 0 : index
    %39 = vector.load %arg5[%c1_36, %c0_37, %c0_38] : memref<3x128x128xbf16, #tpu.memory_space<vmem>>, vector<1x128x128xbf16>
    %40 = vector.shape_cast %39 : vector<1x128x128xbf16> to vector<128x128xbf16>
    %cst_39 = arith.constant dense<0.000000e+00> : vector<16x128xf32>
    %41 = tpu.matmul %38, %40, %cst_39 {dimension_numbers = #tpu.dot_dimension_numbers<[1], [0], [0], [1], [0, 0, 1, 1], [], []>} : vector<16x128xbf16>, vector<128x128xbf16>, vector<16x128xf32> -> vector<16x128xf32>
    %42 = arith.addf %37, %41 : vector<16x128xf32>
    %c4_40 = arith.constant 4 : index
    %c0_41 = arith.constant 0 : index
    %43 = vector.load %arg11[%c4_40, %c0_41] : memref<20x128xbf16, #tpu.memory_space<vmem>>, vector<16x128xbf16>
    %c2_42 = arith.constant 2 : index
    %c0_43 = arith.constant 0 : index
    %c0_44 = arith.constant 0 : index
    %44 = vector.load %arg5[%c2_42, %c0_43, %c0_44] : memref<3x128x128xbf16, #tpu.memory_space<vmem>>, vector<1x128x128xbf16>
    %45 = vector.shape_cast %44 : vector<1x128x128xbf16> to vector<128x128xbf16>
    %cst_45 = arith.constant dense<0.000000e+00> : vector<16x128xf32>
    %46 = tpu.matmul %43, %45, %cst_45 {dimension_numbers = #tpu.dot_dimension_numbers<[1], [0], [0], [1], [0, 0, 1, 1], [], []>} : vector<16x128xbf16>, vector<128x128xbf16>, vector<16x128xf32> -> vector<16x128xf32>
    %47 = arith.addf %42, %46 : vector<16x128xf32>
    %c0_46 = arith.constant 0 : index
    %c0_47 = arith.constant 0 : index
    %48 = vector.load %arg6[%c0_46, %c0_47] : memref<1x128xf32, #tpu.memory_space<vmem>>, vector<1x128xf32>
    %49 = vector.broadcast %48 : vector<1x128xf32> to vector<16x128xf32>
    %50 = arith.addf %47, %49 : vector<16x128xf32>
    %cst_48 = arith.constant 0.000000e+00 : f32
    %51 = vector.broadcast %cst_48 : f32 to vector<16x128xf32>
    %52 = arith.maximumf %50, %51 : vector<16x128xf32>
    %c0_49 = arith.constant 0 : index
    %c0_50 = arith.constant 0 : index
    %53 = vector.load %arg7[%c0_49, %c0_50] : memref<128x128xbf16, #tpu.memory_space<vmem>>, vector<128x128xbf16>
    %cst_51 = arith.constant dense<0.000000e+00> : vector<16x128xf32>
    %54 = tpu.matmul %7, %53, %cst_51 {dimension_numbers = #tpu.dot_dimension_numbers<[1], [0], [0], [1], [0, 0, 1, 1], [], []>} : vector<16x128xbf16>, vector<128x128xbf16>, vector<16x128xf32> -> vector<16x128xf32>
    %c0_52 = arith.constant 0 : index
    %c0_53 = arith.constant 0 : index
    %55 = vector.load %arg8[%c0_52, %c0_53] : memref<1x128xf32, #tpu.memory_space<vmem>>, vector<1x128xf32>
    %56 = vector.broadcast %55 : vector<1x128xf32> to vector<16x128xf32>
    %57 = arith.addf %54, %56 : vector<16x128xf32>
    %58 = arith.addf %52, %57 : vector<16x128xf32>
    %cst_54 = arith.constant 0.000000e+00 : f32
    %59 = vector.broadcast %cst_54 : f32 to vector<16x128xf32>
    %60 = arith.maximumf %58, %59 : vector<16x128xf32>
    %61 = arith.truncf %60 : vector<16x128xf32> to vector<16x128xbf16>
    %c0_55 = arith.constant 0 : index
    %c0_56 = arith.constant 0 : index
    %c0_57 = arith.constant 0 : index
    %62 = vector.load %arg9[%c0_55, %c0_56, %c0_57] : memref<1x16x128xbf16, #tpu.memory_space<vmem>>, vector<1x16x128xbf16>
    %63 = vector.shape_cast %62 : vector<1x16x128xbf16> to vector<16x128xbf16>
    %64 = vector.shape_cast %61 : vector<16x128xbf16> to vector<1x16x128xbf16>
    tpu.vector_store %arg9[%c0_55, %c0_56, %c0_57], %64 {strides = array<i32>} : memref<1x16x128xbf16, #tpu.memory_space<vmem>>, vector<1x16x128xbf16>,
    return
  }
  func.func @transform_0(%arg0: i32, %arg1: i32) -> (i32, i32, i32) {
    %c0_i32 = arith.constant 0 : i32
    %c0_i32_0 = arith.constant 0 : i32
    return %arg0, %arg1, %c0_i32 : i32, i32, i32
  }
  func.func @transform_1(%arg0: i32, %arg1: i32) -> (i32, i32, i32) {
    %c0_i32 = arith.constant 0 : i32
    %c0_i32_0 = arith.constant 0 : i32
    %c0_i32_1 = arith.constant 0 : i32
    %c0_i32_2 = arith.constant 0 : i32
    return %c0_i32, %c0_i32_0, %c0_i32_1 : i32, i32, i32
  }
  func.func @transform_2(%arg0: i32, %arg1: i32) -> (i32, i32) {
    %c0_i32 = arith.constant 0 : i32
    %c0_i32_0 = arith.constant 0 : i32
    %c0_i32_1 = arith.constant 0 : i32
    return %c0_i32, %c0_i32_0 : i32, i32
  }
  func.func @transform_3(%arg0: i32, %arg1: i32) -> (i32, i32, i32) {
    %c0_i32 = arith.constant 0 : i32
    %c0_i32_0 = arith.constant 0 : i32
    %c0_i32_1 = arith.constant 0 : i32
    %c0_i32_2 = arith.constant 0 : i32
    return %c0_i32, %c0_i32_0, %c0_i32_1 : i32, i32, i32
  }
  func.func @transform_4(%arg0: i32, %arg1: i32) -> (i32, i32) {
    %c0_i32 = arith.constant 0 : i32
    %c0_i32_0 = arith.constant 0 : i32
    %c0_i32_1 = arith.constant 0 : i32
    return %c0_i32, %c0_i32_0 : i32, i32
  }
  func.func @transform_5(%arg0: i32, %arg1: i32) -> (i32, i32) {
    %c0_i32 = arith.constant 0 : i32
    %c0_i32_0 = arith.constant 0 : i32
    %c0_i32_1 = arith.constant 0 : i32
    return %c0_i32, %c0_i32_0 : i32, i32
  }
  func.func @transform_6(%arg0: i32, %arg1: i32) -> (i32, i32) {
    %c0_i32 = arith.constant 0 : i32
    %c0_i32_0 = arith.constant 0 : i32
    %c0_i32_1 = arith.constant 0 : i32
    return %c0_i32, %c0_i32_0 : i32, i32
  }
  func.func @transform_7(%arg0: i32, %arg1: i32) -> (i32, i32, i32) {
    %c0_i32 = arith.constant 0 : i32
    %c0_i32_0 = arith.constant 0 : i32
    return %arg0, %arg1, %c0_i32 : i32, i32, i32
  }
}

</mosaic_0001>

<bundles_post_ra>
// kernel: temporal_block_forward.1
= control target key start
LH: loop header
LB: loop body
LE: loop exit
PB: predicated region body
PF: predicated region fallthrough
CT: control target
= control target key end

     0   :  { %s1835_s24 = smov 0   ;;  %s1837_s25 = smov 0   ;;  %s2146_s0 = inlined_call_operand.vmem [shape: bf16[2,16,128], index: 0, kind: input, shape index: {}]   ;;  %s2147_s1 = inlined_call_operand.vmem [shape: bf16[3,128,128], index: 1, kind: input, shape index: {}]   ;;  %s2148_s2 = inlined_call_operand.vmem [shape: f32[1,128], index: 2, kind: input, shape index: {}]   ;;  %s2149_s3 = inlined_call_operand.vmem [shape: bf16[3,128,128], index: 3, kind: input, shape index: {}]   ;;  %s2150_s4 = inlined_call_operand.vmem [shape: f32[1,128], index: 4, kind: input, shape index: {}]   ;;  %s2151_s5 = inlined_call_operand.vmem [shape: bf16[128,128], index: 5, kind: input, shape index: {}]   ;;  %s2152_s6 = inlined_call_operand.vmem [shape: f32[1,128], index: 6, kind: input, shape index: {}]   ;;  %s2153_s7 = inlined_call_operand.vmem [shape: bf16[2,16,128], index: 7, kind: output, shape index: {}]  }
   0x1   :  { %s1839_s26 = smov 0  }
   0x2 LB: > { %s29_s27 = sadd.s32 1, %s1786_s25  ;;  %p1315_p0 = scmp.ge.s32.totalorder %s1790_s26, 1  ;;  %s1790_s26 = sphi %s1839_s26, %s17_s26   ;;  %s1786_s25 = sphi %s1837_s25, %s2157_s25   ;;  %s1782_s24 = sphi %s1835_s24, %s2156_s24  }
   0x3   : > { %p31_p1 = scmp.ge.s32.totalorder %s29_s27, 2  ;;  %p258_p2 = scmp.lt.s32.totalorder %s1790_s26, 3 }
   0x5   : > { %s2159_s27 = smov (%p31_p1, %s29_s27), 0  ;;  %p259_p3 = pnand %p1315_p0, %p258_p2 }
   0x6   : > { %p299_p4 = scmp.lt.s32.totalorder (!%p259_p3), %s1782_s24, 1 }
   0x7   : > { %262 = sbr.rel (%p259_p3) target bundleno = 540 (0x21c), region = 48 }
   0xc   : > { %v1701_v0 = vld [vmem:[%s2147_s1 + $0x78] sm:$0xff]   ;;  %v1792_v1 = vmov 0.0   ;;  %v1703_v3 = vld [vmem:[%s2147_s1 + $0x70] sm:$0xff]   ;;  %vm1793_vm0 = vmmov 0   ;;  %v1794_v5 = vmov 0   ;;  %v1705_v6 = vld [vmem:[%s2147_s1 + $0x68] sm:$0xff]  }
   0xd   : > { %1534 = vmatprep.subr.bf16.mxu0 %v1792_v1  ;;  %1554 = vmatprep.subr.bf16.mxu1 %v1792_v1  ;;  %v1702_v2 = vld [vmem:[%s2147_s1 + $0x38] sm:$0xff]   ;;  %v1704_v4 = vld [vmem:[%s2147_s1 + $0x30] sm:$0xff]   ;;  %323 = vst [vmem:[#allocation2] sm:$0x3] %v1794_v5  ;;  %324 = vst [vmem:[#allocation3] sm:$0x3] %v1794_v5 }
   0xe   : > { %1535 = vmatpush3.bf16.msra.mxu0 %v1701_v0  ;;  %1550 = vmatprep.mubr.msk.bf16.mxu0 %vm1793_vm0, %v1792_v1  ;;  %s2161_s24 = smov (!%p299_p4, %s1782_s24), 1  ;;  %v1706_v7 = vld [vmem:[%s2147_s1 + $0x28] sm:$0xff]   ;;  %v1707_v8 = vld [vmem:[%s2147_s1 + $0x60] sm:$0xff]   ;;  %v1709_v10 = vld [vmem:[%s2147_s1 + $0x58] sm:$0xff]   ;;  %vm337_vm1 = vcmask 1041408   ;;  %vm338_vm2 = vcmask 1045508  }
   0xf   : > { %1555 = vmatpush3.bf16.msra.mxu1 %v1702_v2  ;;  %1536 = vmatprep.subr.bf16.mxu0 %v1792_v1  ;;  %s1460_s19 = sshll.u32 %s2161_s24, 3  ;;  %v1708_v9 = vld [vmem:[%s2147_s1 + $0x20] sm:$0xff]   ;;  %v1710_v11 = vld [vmem:[%s2147_s1 + $0x18] sm:$0xff]   ;;  %v1711_v12 = vld [vmem:[%s2147_s1 + $0x50] sm:$0xff]   ;;  %vm396_vm4 = vcmask 1046528   ;;  %vm608_vm5 = vcmask 1045504  }
  0x10   : > { %1556 = vmatprep.subr.bf16.mxu1 %v1792_v1  ;;  %1570 = vmatprep.mubr.msk.bf16.mxu1 %vm1793_vm0, %v1792_v1  ;;  %s306_s28 = scalar_lea.vmem %s2146_s0, %s1460_s19  ;;  %vm1918_vm3 = vmor %vm337_vm1, %vm338_vm2  ;;  %v1712_v18 = vld [vmem:[%s2147_s1 + $0x10] sm:$0xff]   ;;  %v1713_v22 = vld [vmem:[%s2147_s1 + $0x48] sm:$0xff]   ;;  %s316_s21 = scalar_lea.vmem %s2153_s7, %s1460_s19 }
  0x11   : > { %v1912_v13 = vld [vmem:[%s306_s28] sm:$0xf]  ;;  %v1914_v14 = vld [vmem:[%s306_s28 + $0x4] sm:$0xf]  ;;  %v1714_v23 = vld [vmem:[%s2147_s1 + $0x8] sm:$0xff]  }
  0x12   : > { %1537 = vmatpush3.bf16.msra.mxu0 %v1703_v3  ;;  %v340_v15 = vrot.slane %v1912_v13, 6  ;;  %v342_v16 = vrot.slane %v1914_v14, 6  ;;  %v1715_v24 = vld [vmem:[%s2147_s1 + $0x40] sm:$0xff]   ;;  %v1720_v34 = vld [vmem:[%s2147_s1 + $0xb8] sm:$0xff]   ;;  %v1721_v36 = vld [vmem:[%s2147_s1 + $0xb0] sm:$0xff]  }
  0x13   : > { %1557 = vmatpush3.bf16.msra.mxu1 %v1704_v4  ;;  %1538 = vmatprep.subr.bf16.mxu0 %v1792_v1  ;;  %v1716_v25 = vld [vmem:[%s2147_s1] sm:$0xff]   ;;  %v1722_v37 = vld [vmem:[%s2147_s1 + $0xa8] sm:$0xff]   ;;  %v1724_v39 = vld [vmem:[%s2147_s1 + $0x98] sm:$0xff]  }
  0x14   : > { %1558 = vmatprep.subr.bf16.mxu1 %v1792_v1  ;;  %v341_v19 = vrot.slane %v340_v15, 4  ;;  %v344_v20 = vrot.slane %v342_v16, 4  ;;  %348 = vst [vmem:[#allocation2] sm:$0xc] %v340_v15  ;;  %v1723_v38 = vld [vmem:[%s2147_s1 + $0xa0] sm:$0xff]   ;;  %v1725_v40 = vld [vmem:[%s2147_s1 + $0x90] sm:$0xff]  }
  0x15   : > { %v1726_v42 = vld [vmem:[%s2147_s1 + $0x88] sm:$0xff]   ;;  %v1727_v45 = vld [vmem:[%s2147_s1 + $0x80] sm:$0xff]   ;;  %v1730_v49 = vld [vmem:[%s2149_s3 + $0x38] sm:$0xff]  }
  0x16   : > { %1539 = vmatpush3.bf16.msra.mxu0 %v1705_v6  ;;  %v343_v21 = vsel %vm1918_vm3, %v341_v19, %v342_v16  ;;  %350 = vst [vmem:[#allocation2 + $0x8] sm:$0x3] %v344_v20  ;;  %v1731_v50 = vld [vmem:[%s2149_s3 + $0x78] sm:$0xff]   ;;  %v1732_v51 = vld [vmem:[%s2149_s3 + $0x30] sm:$0xff]   ;;  %v1734_v53 = vld [vmem:[%s2149_s3 + $0x28] sm:$0xff]  }
  0x17   : > { %1559 = vmatpush3.bf16.msra.mxu1 %v1706_v7  ;;  %1540 = vmatprep.subr.bf16.mxu0 %v1792_v1  ;;  %349 = vst [vmem:[#allocation2 + $0x4] sm:$0xf] %v343_v21  ;;  %v1733_v52 = vld [vmem:[%s2149_s3 + $0x70] sm:$0xff]   ;;  %v1735_v54 = vld [vmem:[%s2149_s3 + $0x68] sm:$0xff]   ;;  %v1736_v55 = vld [vmem:[%s2149_s3 + $0x20] sm:$0xff]  }
  0x18   : > { %1560 = vmatprep.subr.bf16.mxu1 %v1792_v1  ;;  %v1737_v56 = vld [vmem:[%s2149_s3 + $0x60] sm:$0xff]   ;;  %v1738_v57 = vld [vmem:[%s2149_s3 + $0x18] sm:$0xff]   ;;  %v1740_v59 = vld [vmem:[%s2149_s3 + $0x10] sm:$0xff]  }
  0x19   : > { %v1739_v58 = vld [vmem:[%s2149_s3 + $0x58] sm:$0xff]   ;;  %v1741_v60 = vld [vmem:[%s2149_s3 + $0x50] sm:$0xff]   ;;  %v1742_v61 = vld [vmem:[%s2149_s3 + $0x8] sm:$0xff]  }
  0x1a   : > { %1541 = vmatpush3.bf16.msra.mxu0 %v1707_v8  ;;  %v1743_v62 = vld [vmem:[%s2149_s3 + $0x48] sm:$0xff]   ;;  %v1744_v63 = vld [vmem:[%s2149_s3] sm:$0xff]   ;;  %v1750_v17 = vld [vmem:[%s2149_s3 + $0xb8] sm:$0xff]  }
  0x1b   : > { %1561 = vmatpush3.bf16.msra.mxu1 %v1708_v9  ;;  %1542 = vmatprep.subr.bf16.mxu0 %v1792_v1  ;;  %v369_v26 = vld [vmem:[#allocation2] sm:$0xe] }
  0x1c   : > { %1562 = vmatprep.subr.bf16.mxu1 %v1792_v1  ;;  %v351_v27 = vld [vmem:[#allocation2] sm:$0xf] }
  0x1d   : > { %v1718_v28 = vld [vmem:[#allocation2 + $0x8] ss:$0 sps:$4 sm:$0x11]   ;;  %v583_v41 = vld [vmem:[#allocation2] sm:$0xc] }
  0x1e   : > { %1543 = vmatpush3.bf16.msra.mxu0 %v1709_v10  ;;  %v352_v29 = vld [vmem:[#allocation2 + $0x4] sm:$0xf]  ;;  %v398_v31 = vrot.slane %v1718_v28, 1  ;;  %v1729_v44 = vld [vmem:[#allocation2 + $0x8] ss:$0 sps:$4 sm:$0x33]  }
  0x1f   : > { %1563 = vmatpush3.bf16.msra.mxu1 %v1710_v11  ;;  %1544 = vmatprep.subr.bf16.mxu0 %v1792_v1  ;;  %v1336_v30 = vcombine.low %v369_v26, %v352_v29  ;;  %v1346_v32 = vcombine.low %v351_v27, %v352_v29  ;;  %v1371_v43 = vcombine.low %v583_v41, %v352_v29  ;;  %v610_v47 = vrot.slane %v1729_v44, 2  ;;  %v1745_v0 = vld [vmem:[%s2149_s3 + $0x40] sm:$0xff]   ;;  %v1752_v44 = vld [vmem:[%s2149_s3 + $0xb0] sm:$0xff]  }
  0x20   : > { %1564 = vmatprep.subr.bf16.mxu1 %v1792_v1 }
  0x21   : > { %v397_v33 = vrot.slane %v1336_v30, 1  ;;  %v609_v46 = vrot.slane %v1371_v43, 2 }
  0x22   : > { %1545 = vmatpush3.bf16.msra.mxu0 %v1711_v12  ;;  %v1381_v12 = vld [vmem:[%s2148_s2] ss:$0 sm:$0xff] }
  0x23   : > { %1565 = vmatpush3.bf16.msra.mxu1 %v1712_v18  ;;  %1546 = vmatprep.subr.bf16.mxu0 %v1792_v1  ;;  %v399_v35 = vsel %vm396_vm4, %v397_v33, %v398_v31  ;;  %v611_v48 = vsel %vm608_vm5, %v609_v46, %v610_v47  ;;  %v1747_v33 = vld [vmem:[%s2151_s5 + $0x38] sm:$0xff]   ;;  %v1754_v46 = vld [vmem:[%s2149_s3 + $0xa8] sm:$0xff]   ;;  %v1755_v47 = vld [vmem:[%s2151_s5 + $0x20] sm:$0xff]  }
  0x24   : > { %1566 = vmatprep.subr.bf16.mxu1 %v1792_v1 }
  0x26   : > { %1547 = vmatpush3.bf16.msra.mxu0 %v1713_v22 }
  0x27   : > { %1567 = vmatpush3.bf16.msra.mxu1 %v1714_v23  ;;  %1548 = vmatprep.subr.bf16.mxu0 %v1792_v1 }
  0x28   : > { %1568 = vmatprep.subr.bf16.mxu1 %v1792_v1 }
  0x2a   : > { %1549 = vmatpush3.bf16.msra.mxu0 %v1715_v24 }
  0x2b   : > { %1569 = vmatpush3.bf16.msra.mxu1 %v1716_v25  ;;  %1574 = vmatprep.subr.bf16.mxu0 %v1792_v1 }
  0x2c   : > { %1594 = vmatprep.subr.bf16.mxu1 %v1792_v1 }
  0x2d   : > { %1551 = vmatmul.mubr.bf16.vlgmr.msra.gmra.mxu0 %v399_v35 }
  0x2e   : > { %1571 = vmatmul.mubr.bf16.vlgmr.msra.gmra.mxu1 %v1346_v32  ;;  %1575 = vmatpush3.bf16.msra.mxu0 %v1720_v34 }
  0x2f   : > { %1610 = vmatprep.mubr.msk.bf16.mxu1 %vm1793_vm0, %v1792_v1  ;;  %1590 = vmatprep.mubr.msk.bf16.mxu0 %vm1793_vm0, %v1792_v1 }
  0x30   : > { %1576 = vmatprep.subr.bf16.mxu0 %v1792_v1  ;;  %1595 = vmatpush3.bf16.msra.mxu1 %v1731_v50  ;;  %v1758_v50 = vld [vmem:[%s2149_s3 + $0x98] sm:$0xff]  }
  0x31   : > { %1596 = vmatprep.subr.bf16.mxu1 %v1792_v1 }
  0x32   : > { %1577 = vmatpush3.bf16.msra.mxu0 %v1721_v36 }
  0x33   : > { %1578 = vmatprep.subr.bf16.mxu0 %v1792_v1 }
  0x34   : > { %1597 = vmatpush3.bf16.msra.mxu1 %v1733_v52  ;;  %v1760_v52 = vld [vmem:[%s2149_s3 + $0x90] sm:$0xff]  }
  0x35   : > { %1598 = vmatprep.subr.bf16.mxu1 %v1792_v1 }
  0x36   : > { %1579 = vmatpush3.bf16.msra.mxu0 %v1722_v37 }
  0x37   : > { %1580 = vmatprep.subr.bf16.mxu0 %v1792_v1 }
  0x38   : > { %1599 = vmatpush3.bf16.msra.mxu1 %v1735_v54  ;;  %v1762_v54 = vld [vmem:[%s2149_s3 + $0x88] sm:$0xff]  }
  0x39   : > { %1600 = vmatprep.subr.bf16.mxu1 %v1792_v1 }
  0x3a   : > { %1581 = vmatpush3.bf16.msra.mxu0 %v1723_v38 }
  0x3b   : > { %1582 = vmatprep.subr.bf16.mxu0 %v1792_v1 }
  0x3c   : > { %1601 = vmatpush3.bf16.msra.mxu1 %v1737_v56 }
  0x3d   : > { %1602 = vmatprep.subr.bf16.mxu1 %v1792_v1 }
  0x3e   : > { %1583 = vmatpush3.bf16.msra.mxu0 %v1724_v39 }
  0x3f   : > { %1584 = vmatprep.subr.bf16.mxu0 %v1792_v1 }
  0x40   : > { %1603 = vmatpush3.bf16.msra.mxu1 %v1739_v58 }
  0x41   : > { %1604 = vmatprep.subr.bf16.mxu1 %v1792_v1 }
  0x42   : > { %1585 = vmatpush3.bf16.msra.mxu0 %v1725_v40 }
  0x43   : > { %1586 = vmatprep.subr.bf16.mxu0 %v1792_v1 }
  0x44   : > { %1605 = vmatpush3.bf16.msra.mxu1 %v1741_v60  ;;  %v1447_v60 = vcombine.low %v1912_v13, %v1914_v14 }
  0x45   : > { %1606 = vmatprep.subr.bf16.mxu1 %v1792_v1 }
  0x46   : > { %1587 = vmatpush3.bf16.msra.mxu0 %v1726_v42  ;;  %v1751_v42 = vld [vmem:[%s2151_s5 + $0x30] sm:$0xff]  }
  0x47   : > { %1588 = vmatprep.subr.bf16.mxu0 %v1792_v1 }
  0x48   : > { %1607 = vmatpush3.bf16.msra.mxu1 %v1743_v62 }
  0x49   : > { %1608 = vmatprep.subr.bf16.mxu1 %v1792_v1 }
  0x4a   : > { %1589 = vmatpush3.bf16.msra.mxu0 %v1727_v45  ;;  %v1753_v45 = vld [vmem:[%s2151_s5 + $0x28] sm:$0xff]  }
  0x4b   : > { %1614 = vmatprep.subr.bf16.mxu0 %v1792_v1 }
  0x4c   : > { %1609 = vmatpush3.bf16.msra.mxu1 %v1745_v0 }
  0x4d   : > { %1591 = vmatmul.mubr.bf16.vlgmr.msra.gmra.mxu0 %v611_v48  ;;  %1634 = vmatprep.subr.bf16.mxu1 %v1792_v1  ;;  %v1756_v48 = vld [vmem:[%s2149_s3 + $0xa0] sm:$0xff]  }
  0x4e   : > { %1630 = vmatprep.mubr.msk.bf16.mxu0 %vm1793_vm0, %v1792_v1  ;;  %1615 = vmatpush3.bf16.msra.mxu0 %v1730_v49  ;;  %v1757_v49 = vld [vmem:[%s2151_s5 + $0x18] sm:$0xff]  }
  0x4f   : > { %1616 = vmatprep.subr.bf16.mxu0 %v1792_v1 }
  0x52   : > { %1617 = vmatpush3.bf16.msra.mxu0 %v1732_v51  ;;  %v1759_v51 = vld [vmem:[%s2151_s5 + $0x10] sm:$0xff]  }
  0x53   : > { %1618 = vmatprep.subr.bf16.mxu0 %v1792_v1 }
  0x56   : > { %1619 = vmatpush3.bf16.msra.mxu0 %v1734_v53  ;;  %v1761_v53 = vld [vmem:[%s2151_s5 + $0x8] sm:$0xff]  }
  0x57   : > { %1620 = vmatprep.subr.bf16.mxu0 %v1792_v1 }
  0x5a   : > { %1621 = vmatpush3.bf16.msra.mxu0 %v1736_v55  ;;  %v1763_v55 = vld [vmem:[%s2151_s5] sm:$0xff]  }
  0x5b   : > { %1622 = vmatprep.subr.bf16.mxu0 %v1792_v1 }
  0x5e   : > { %1623 = vmatpush3.bf16.msra.mxu0 %v1738_v57 }
  0x5f   : > { %1624 = vmatprep.subr.bf16.mxu0 %v1792_v1 }
  0x62   : > { %1625 = vmatpush3.bf16.msra.mxu0 %v1740_v59  ;;  %v1764_v59 = vld [vmem:[%s2149_s3 + $0x80] sm:$0xff]  }
  0x63   : > { %1626 = vmatprep.subr.bf16.mxu0 %v1792_v1 }
  0x66   : > { %1627 = vmatpush3.bf16.msra.mxu0 %v1742_v61 }
  0x67   : > { %1628 = vmatprep.subr.bf16.mxu0 %v1792_v1 }
  0x6a   : > { %1629 = vmatpush3.bf16.msra.mxu0 %v1744_v63 }
  0x6b   : > { %1654 = vmatprep.subr.bf16.mxu0 %v1792_v1 }
  0xed   : > { %v483_v3 = vpop.f32.mrf.mxu0 }
  0xee   : > { %v576_v2 = vpop.f32.mrf.mxu1 }
  0xef   : > { %v1552_v5 = vpop.f32.mrf.mxu0  ;;  %v577_v10 = vadd.f32 %v576_v2, %v483_v3 }
  0xf0   : > { %v1572_v4 = vpop.f32.mrf.mxu1 }
  0xf1   : > { %v486_v7 = vpop.f32.mrf.mxu0 }
  0xf2   : > { %v579_v6 = vpop.f32.mrf.mxu1 }
  0xf3   : > { %v1553_v9 = vpop.f32.mrf.mxu0  ;;  %v580_v18 = vadd.f32 %v579_v6, %v486_v7 }
  0xf4   : > { %v1573_v8 = vpop.f32.mrf.mxu1 }
 0x10d   : > { %v695_v11 = vpop.f32.mrf.mxu0 }
 0x10e   : > { %v702_v15 = vadd.f32 %v695_v11, %v577_v10 }
 0x10f   : > { %v1592_v16 = vpop.f32.mrf.mxu0 }
 0x110   : > { %v711_v19 = vadd.f32 %v1381_v12, %v702_v15  ;;  %v1446_v15 = vld [vmem:[%s2152_s6] ss:$0 sm:$0xff] }
 0x111   : > { %v698_v20 = vpop.f32.mrf.mxu0 }
 0x112   : > { %v713_v21 = vmax.f32 %v711_v19, 0.0  ;;  %v703_v22 = vadd.f32 %v698_v20, %v580_v18 }
 0x113   : > { %v1593_v23 = vpop.f32.mrf.mxu0 }
 0x114   : > { %v1462_v24 = vpack.c.bf16 %v713_v21, %v713_v21  ;;  %v712_v25 = vadd.f32 %v1381_v12, %v703_v22 }
 0x116   : > { %v721_v26 = vrot.slane %v1462_v24, 6  ;;  %v714_v27 = vmax.f32 %v712_v25, 0.0 }
 0x118   : > { %729 = vst [vmem:[#allocation3] sm:$0xc] %v721_v26  ;;  %v1463_v28 = vpack.c.bf16 %v714_v27, %v714_v27  ;;  %v722_v29 = vrot.slane %v721_v26, 4 }
 0x11a   : > { %v723_v30 = vrot.slane %v1463_v28, 6 }
 0x11c   : > { %v724_v31 = vsel %vm1918_vm3, %v722_v29, %v723_v30  ;;  %v725_v32 = vrot.slane %v723_v30, 4 }
 0x11d   : > { %730 = vst [vmem:[#allocation3 + $0x4] sm:$0xf] %v724_v31 }
 0x11e   : > { %731 = vst [vmem:[#allocation3 + $0x8] sm:$0x3] %v725_v32 }
 0x11f   : > { %v732_v34 = vld [vmem:[#allocation3] sm:$0xf] }
 0x120   : > { %v750_v36 = vld [vmem:[#allocation3] sm:$0xe] }
 0x121   : > { %v963_v56 = vld [vmem:[#allocation3] sm:$0xc] }
 0x124   : > { %v733_v35 = vld [vmem:[#allocation3 + $0x4] sm:$0xf] }
 0x125   : > { %v1410_v37 = vcombine.low %v732_v34, %v733_v35  ;;  %v1400_v38 = vcombine.low %v750_v36, %v733_v35  ;;  %v1749_v39 = vld [vmem:[#allocation3 + $0x8] ss:$0 sps:$4 sm:$0x11]   ;;  %v1435_v57 = vcombine.low %v963_v56, %v733_v35 }
 0x126   : > { %v778_v41 = vrot.slane %v1749_v39, 1  ;;  %v1767_v58 = vld [vmem:[#allocation3 + $0x8] ss:$0 sps:$4 sm:$0x33]  }
 0x127   : > { %1631 = vmatmul.mubr.bf16.vlgmr.msra.gmra.mxu0 %v1410_v37  ;;  %v777_v40 = vrot.slane %v1400_v38, 1  ;;  %v988_v61 = vrot.slane %v1435_v57, 2  ;;  %v989_v62 = vrot.slane %v1767_v58, 2 }
 0x128   : > { %1655 = vmatpush3.bf16.msra.mxu0 %v1747_v33  ;;  %1670 = vmatprep.mubr.msk.bf16.mxu0 %vm1793_vm0, %v1792_v1 }
 0x129   : > { %v779_v43 = vsel %vm396_vm4, %v777_v40, %v778_v41  ;;  %1656 = vmatprep.subr.bf16.mxu0 %v1792_v1  ;;  %v990_v63 = vsel %vm608_vm5, %v988_v61, %v989_v62 }
 0x12a   : > { %1611 = vmatmul.mubr.bf16.vlgmr.msra.gmra.mxu1 %v779_v43 }
 0x12b   : > { %1635 = vmatpush3.bf16.msra.mxu1 %v1750_v17  ;;  %1650 = vmatprep.mubr.msk.bf16.mxu1 %vm1793_vm0, %v1792_v1 }
 0x12c   : > { %1657 = vmatpush3.bf16.msra.mxu0 %v1751_v42  ;;  %1636 = vmatprep.subr.bf16.mxu1 %v1792_v1 }
 0x12d   : > { %1658 = vmatprep.subr.bf16.mxu0 %v1792_v1 }
 0x12f   : > { %1637 = vmatpush3.bf16.msra.mxu1 %v1752_v44 }
 0x130   : > { %1659 = vmatpush3.bf16.msra.mxu0 %v1753_v45  ;;  %1638 = vmatprep.subr.bf16.mxu1 %v1792_v1 }
 0x131   : > { %1660 = vmatprep.subr.bf16.mxu0 %v1792_v1 }
 0x133   : > { %1639 = vmatpush3.bf16.msra.mxu1 %v1754_v46 }
 0x134   : > { %1661 = vmatpush3.bf16.msra.mxu0 %v1755_v47  ;;  %1640 = vmatprep.subr.bf16.mxu1 %v1792_v1 }
 0x135   : > { %1662 = vmatprep.subr.bf16.mxu0 %v1792_v1 }
 0x137   : > { %1641 = vmatpush3.bf16.msra.mxu1 %v1756_v48 }
 0x138   : > { %1663 = vmatpush3.bf16.msra.mxu0 %v1757_v49  ;;  %1642 = vmatprep.subr.bf16.mxu1 %v1792_v1 }
 0x139   : > { %1664 = vmatprep.subr.bf16.mxu0 %v1792_v1 }
 0x13b   : > { %1643 = vmatpush3.bf16.msra.mxu1 %v1758_v50 }
 0x13c   : > { %1665 = vmatpush3.bf16.msra.mxu0 %v1759_v51  ;;  %1644 = vmatprep.subr.bf16.mxu1 %v1792_v1 }
 0x13d   : > { %1666 = vmatprep.subr.bf16.mxu0 %v1792_v1 }
 0x13f   : > { %1645 = vmatpush3.bf16.msra.mxu1 %v1760_v52 }
 0x140   : > { %1667 = vmatpush3.bf16.msra.mxu0 %v1761_v53  ;;  %1646 = vmatprep.subr.bf16.mxu1 %v1792_v1 }
 0x141   : > { %1668 = vmatprep.subr.bf16.mxu0 %v1792_v1 }
 0x143   : > { %1647 = vmatpush3.bf16.msra.mxu1 %v1762_v54 }
 0x144   : > { %1669 = vmatpush3.bf16.msra.mxu0 %v1763_v55  ;;  %1648 = vmatprep.subr.bf16.mxu1 %v1792_v1  ;;  %v1445_v1 = vld [vmem:[%s2150_s4] ss:$0 sm:$0xff] }
 0x147   : > { %1649 = vmatpush3.bf16.msra.mxu1 %v1764_v59  ;;  %1671 = vmatmul.mubr.bf16.vlgmr.msra.gmra.mxu0 %v1447_v60 }
 0x14a   : > { %1651 = vmatmul.mubr.bf16.vlgmr.msra.gmra.mxu1 %v990_v63 }
 0x1e7   : > { %v956_v0 = vpop.f32.mrf.mxu0 }
 0x1e9   : > { %v1632_v2 = vpop.f32.mrf.mxu0 }
 0x1ea   : > { %v863_v3 = vpop.f32.mrf.mxu1 }
 0x1eb   : > { %v959_v4 = vpop.f32.mrf.mxu0  ;;  %v957_v13 = vadd.f32 %v956_v0, %v863_v3 }
 0x1ec   : > { %v1612_v5 = vpop.f32.mrf.mxu1 }
 0x1ed   : > { %v1633_v6 = vpop.f32.mrf.mxu0 }
 0x1ee   : > { %v866_v7 = vpop.f32.mrf.mxu1 }
 0x1ef   : > { %v960_v18 = vadd.f32 %v959_v4, %v866_v7 }
 0x1f0   : > { %v1613_v8 = vpop.f32.mrf.mxu1 }
 0x207   : > { %v1203_v9 = vpop.f32.mrf.mxu0 }
 0x208   : > { %v1204_v22 = vadd.f32 %v1446_v15, %v1203_v9 }
 0x209   : > { %v1672_v14 = vpop.f32.mrf.mxu0 }
 0x20a   : > { %v1074_v10 = vpop.f32.mrf.mxu1 }
 0x20b   : > { %v1081_v11 = vadd.f32 %v1074_v10, %v957_v13  ;;  %v1206_v12 = vpop.f32.mrf.mxu0 }
 0x20c   : > { %v1652_v16 = vpop.f32.mrf.mxu1  ;;  %v1207_v28 = vadd.f32 %v1446_v15, %v1206_v12 }
 0x20d   : > { %v1090_v19 = vadd.f32 %v1445_v1, %v1081_v11  ;;  %v1673_v20 = vpop.f32.mrf.mxu0 }
 0x20e   : > { %v1077_v21 = vpop.f32.mrf.mxu1 }
 0x20f   : > { %v1092_v23 = vmax.f32 %v1090_v19, 0.0  ;;  %v1082_v24 = vadd.f32 %v1077_v21, %v960_v18 }
 0x210   : > { %v1653_v25 = vpop.f32.mrf.mxu1 }
 0x211   : > { %v1091_v26 = vadd.f32 %v1445_v1, %v1082_v24  ;;  %v1210_v27 = vadd.f32 %v1204_v22, %v1092_v23 }
 0x213   : > { %v1093_v29 = vmax.f32 %v1091_v26, 0.0  ;;  %v1212_v31 = vmax.f32 %v1210_v27, 0.0 }
 0x215   : > { %v1211_v30 = vadd.f32 %v1207_v28, %v1093_v29 }
 0x217   : > { %v1213_v32 = vmax.f32 %v1211_v30, 0.0 }
 0x219   : > { %v1469_v33 = vpack.c.bf16 %v1213_v32, %v1212_v31 }
 0x21b   : > { %1470 = vst [vmem:[%s316_s21] sm:$0xff] %v1469_v33  }
 0x21c PF: > { %s17_s26 = sadd.s32 1, %s1790_s26   ;;  %s2156_s24 = smov %s1786_s25 }
 0x21d   : > { %p14_p5 = scmp.ge.s32.totalorder %s17_s26, 4   ;;  %s2157_s25 = smov %s2159_s27 }
 0x21f   :  { %16 = sbr.rel (!%p14_p5) target bundleno = 2 (0x2), region = 90 }

</bundles_post_ra>
